<compile_context>
chip_gen: v5e
topology: v5e:2x2
jax: 0.10.0
libtpu: 0.0.40
codegen_flags: <defaults>
</compile_context>

<pallas_src>
import math

import jax
import jax.numpy as jnp
from jax.experimental import pallas as pl
from jax.experimental.pallas import tpu as pltpu


def _cdiv(a, b):
    return (a + b - 1) // b


def ensemble_chunk_kernel(x_ref, w_ref, b_ref, ind_ref, cls_ref, lbl_ref,
                          valid_ref, out_ref):
    """One grid step = one chunk of G packed ensemble members."""
    # [B, G*NC] logits in one lane-dense MXU pass (f32 accumulation).
    logits = jax.lax.dot_general(
        x_ref[...], w_ref[0],
        dimension_numbers=(((1,), (1,)), ((), ())),
        preferred_element_type=jnp.float32,
    ) + b_ref[0]                                            # [B, GNC] f32
    B, GNC = logits.shape

    # Vectorized per-member softmax cross-entropy.
    # Single row max as the LSE shift: mathematically exact (the shift
    # cancels) and layout friendly; only loses precision if members' logit
    # scales diverge by >~80 (then a per-member/segment max would be needed).
    m = jnp.max(logits, axis=-1, keepdims=True)             # [B, 1]
    e = jnp.exp(logits - m)                                 # [B, GNC]

    # Per-member sum-exp with one small f32 matmul against the block
    # indicator (the MXU is otherwise idle here), then one log over [B, G].
    sumexp = jax.lax.dot_general(
        e, ind_ref[...],
        dimension_numbers=(((1,), (0,)), ((), ())),
        preferred_element_type=jnp.float32,
    )                                                       # [B, G]
    lse = m + jnp.log(sumexp)                               # [B, G]
    # Zero out padded (invalid) members.  jnp.where (not a multiply) so a
    # padded member's underflowed sum-exp (-inf log) cannot poison the sum.
    lse = jnp.where(valid_ref[0] > 0.5, lse, 0.0)

    # Picked-logit term summed over all members at once: mask is
    # (class-id-of-column == label).  Padded members contribute exactly 0
    # because their logits are exactly 0 (zero weights, zero bias).
    mask = (jnp.broadcast_to(cls_ref[...], (B, GNC)) ==
            jnp.broadcast_to(lbl_ref[...], (B, GNC)))
    picked_sum = jnp.sum(jnp.where(mask, logits, 0.0), axis=-1, keepdims=True)

    # chunk_loss = sum_g mean_b( lse[b, g] - picked[b, g] )
    nll_row = jnp.sum(lse, axis=-1, keepdims=True) - picked_sum   # [B, 1]
    chunk_loss = jnp.mean(nll_row)

    # Lane-dense output block; the wrapper reads element [chunk, 0, 0].
    out_ref[...] = jnp.broadcast_to(chunk_loss, out_ref.shape).astype(out_ref.dtype)


def _tpu_vmem_profile():
    """Per-generation chunk/VMEM tuning derived from the physical VMEM size."""
    try:
        capacity = int(pltpu.get_tpu_info().vmem_capacity_bytes)
    except Exception:
        capacity = 64 << 20          # unknown -> assume the tighter v7x budget
    if capacity >= (100 << 20):
        # v5e / v6e: 128 MiB physical VMEM, slower HBM -> bigger chunks.
        return dict(chunk_budget=12 << 20,
                    vmem_cap=min(int(0.75 * capacity), 96 << 20),
                    prefer_even_chunks=False)
    # v7x-like: 64 MiB per TensorCore, 2 TCs -> stay <= ~40 MiB, even chunks.
    return dict(chunk_budget=7 << 20,
                vmem_cap=min(int(0.65 * capacity), 40 << 20),
                prefer_even_chunks=True)


def pack_ensemble_params(weights, biases, *, chunk_budget_bytes=None,
                         prefer_even_chunks=None):
    """Repack [N, D, NC] / [N, NC] params into the kernel's streamed layout.

    In a training loop this should be done once (or params should simply be
    kept in this layout); repacking per step re-reads the whole weight tensor
    in HBM and would dominate the kernel's own traffic.
    """
    N, D, NC = weights.shape
    prof = _tpu_vmem_profile()
    if chunk_budget_bytes is None:
        chunk_budget_bytes = prof["chunk_budget"]
    if prefer_even_chunks is None:
        prefer_even_chunks = prof["prefer_even_chunks"]

    # Members per grid step: bounded by the bf16 W-chunk budget and by the
    # [G*NC, G] f32 indicator staying <= budget/4.
    g_w = chunk_budget_bytes // (NC * D * 2)
    g_ind = math.isqrt(max(1, chunk_budget_bytes // (16 * NC)))
    g_cap = max(1, min(N, g_w, g_ind))
    num_chunks = _cdiv(N, g_cap)
    if prefer_even_chunks and num_chunks > 1 and num_chunks % 2:
        num_chunks += 1                       # balance the 2 TCs on v7x
    G = _cdiv(N, num_chunks)                  # balanced chunks, minimal padding
    n_pad = num_chunks * G - N
    GNC = G * NC

    # bf16 cast BEFORE the transpose: the repack then moves half the bytes.
    w_t = jnp.transpose(weights.astype(jnp.bfloat16), (0, 2, 1))   # [N, NC, D]
    b_f32 = biases.astype(jnp.float32)
    if n_pad:
        w_t = jnp.concatenate(
            [w_t, jnp.zeros((n_pad, NC, D), jnp.bfloat16)], axis=0)
        b_f32 = jnp.concatenate(
            [b_f32, jnp.zeros((n_pad, NC), jnp.float32)], axis=0)
    w_packed = w_t.reshape(num_chunks, GNC, D)        # lane-dense: D last
    b_packed = b_f32.reshape(num_chunks, 1, GNC)

    # Small constants consumed by the kernel.
    col = jnp.arange(GNC, dtype=jnp.int32)
    indicator = (col[:, None] // NC ==
                 jnp.arange(G, dtype=jnp.int32)[None, :]).astype(jnp.float32)
    cls_row = (col % NC).reshape(1, GNC)
    valid = (jnp.arange(num_chunks * G) < N).astype(jnp.float32)
    valid = valid.reshape(num_chunks, 1, G)

    meta = dict(N=N, D=D, NC=NC, G=G, num_chunks=num_chunks, n_pad=n_pad,
                vmem_cap=prof["vmem_cap"])
    return (w_packed, b_packed, indicator, cls_row, valid), meta


def ensemble_forward_packed(x_nchw, labels, packed, meta):
    w_packed, b_packed, indicator, cls_row, valid = packed
    N, D, NC = meta["N"], meta["D"], meta["NC"]
    G, num_chunks = meta["G"], meta["num_chunks"]
    GNC = G * NC
    B = x_nchw.shape[0]

    # x streamed in bf16 like W (checked against a bf16 reference in __main__).
    # Keep x in f32 here if tighter parity with the f32 module is required —
    # W remains the bandwidth-critical operand either way.
    x_flat = x_nchw.reshape(B, D).astype(jnp.bfloat16)
    labels2d = labels.reshape(B, 1).astype(jnp.int32)

    # TODO(synk): tile the batch dimension (grid (chunk, batch_tile): chunk
    # outer + "parallel", batch inner + "arbitrary", W index_map independent of
    # the batch axis, VMEM scratch accumulator with @pl.when init/finalize)
    # once B*D threatens the VMEM budget; for these shapes x stays resident.

    # Explicit VMEM budget: double-buffered inputs + in-kernel f32 temps,
    # ~1.4x headroom, capped per generation (from pltpu.get_tpu_info()).
    gnc_lanes = _cdiv(GNC, 128) * 128
    needed = (2 * B * D * 2                      # x (bf16)
              + 2 * GNC * D * 2                  # W chunk buffers (bf16)
              + 2 * GNC * 4                      # bias buffers
              + 2 * GNC * G * 4                  # indicator buffers
              + 6 * 8 * 128 * 4                  # cls/labels/valid/out blocks
              + 10 * 8 * gnc_lanes * 4)          # in-kernel f32 temporaries
    vmem_limit = int(min(max(int(1.4 * needed), 16 << 20), meta["vmem_cap"]))

    out = pl.pallas_call(
        ensemble_chunk_kernel,
        out_shape=jax.ShapeDtypeStruct((num_chunks, 8, 128), jnp.float32),
        grid_spec=pltpu.PrefetchScalarGridSpec(
            num_scalar_prefetch=0,
            grid=(num_chunks,),
            in_specs=[
                pl.BlockSpec((B, D), lambda i: (0, 0)),          # x (resident)
                pl.BlockSpec((1, GNC, D), lambda i: (i, 0, 0)),  # W chunk
                pl.BlockSpec((1, 1, GNC), lambda i: (i, 0, 0)),  # bias chunk
                pl.BlockSpec((GNC, G), lambda i: (0, 0)),        # block indicator
                pl.BlockSpec((1, GNC), lambda i: (0, 0)),        # class-id row
                pl.BlockSpec((B, 1), lambda i: (0, 0)),          # labels
                pl.BlockSpec((1, 1, G), lambda i: (i, 0, 0)),    # member validity
            ],
            out_specs=pl.BlockSpec((1, 8, 128), lambda i: (i, 0, 0)),
        ),
        compiler_params=pltpu.CompilerParams(
            dimension_semantics=("parallel",),   # chunks are independent
            vmem_limit_bytes=vmem_limit,
        ),
    )(x_flat, w_packed, b_packed, indicator, cls_row, labels2d, valid)

    # Mean over the TRUE number of members (padded members contribute 0).
    return jnp.sum(out[:, 0, 0]) / jnp.float32(N)


def ensemble_forward(x_nchw, weights, biases, labels, *, chunk_budget_bytes=None):
    """Convenience wrapper: pack (should be cached in real use) + run."""
    packed, meta = pack_ensemble_params(weights, biases,
                                        chunk_budget_bytes=chunk_budget_bytes)
    return ensemble_forward_packed(x_nchw, labels, packed, meta)


def ensemble_forward_ref(x_nchw, weights, biases, labels, *,
                         stream_dtype=jnp.float32):
    """Pure-JAX reference mirroring EnsembleModel.forward."""
    B = x_nchw.shape[0]
    N, D, NC = weights.shape
    x_flat = x_nchw.reshape(B, D).astype(stream_dtype)
    y1h = (labels[:, None] == jnp.arange(NC, dtype=labels.dtype)[None, :]
           ).astype(jnp.float32)
    total = jnp.float32(0.0)
    for i in range(N):
        logits = jnp.dot(x_flat, weights[i].astype(stream_dtype),
                         preferred_element_type=jnp.float32) + biases[i]
        m = jnp.max(logits, axis=-1, keepdims=True)
        lse = (m + jnp.log(jnp.sum(jnp.exp(logits - m), axis=-1,
                                   keepdims=True)))[:, 0]
        nll = lse - jnp.sum(y1h * logits, axis=-1)
        total = total + jnp.mean(nll)
    return total / N


if __name__ == "__main__":
    key = jax.random.PRNGKey(0)
    B, C, H, W = 2, 4, 16, 16
    D = C * H * W
    NUM_CLASSES = 16
    N_MODELS = 3

    kx, kw, kb, ky, kw2, kb2 = jax.random.split(key, 6)
    x = jax.random.normal(kx, (B, C, H, W), dtype=jnp.float32)
    labels = jax.random.randint(ky, (B,), 0, NUM_CLASSES, dtype=jnp.int32)

    weights = 0.02 * jax.random.normal(kw, (N_MODELS, D, NUM_CLASSES),
                                       dtype=jnp.float32)
    biases = 0.01 * jax.random.normal(kb, (N_MODELS, NUM_CLASSES),
                                      dtype=jnp.float32)

    loss = jax.block_until_ready(ensemble_forward(x, weights, biases, labels))

    # Apples-to-apples check (bf16-streamed reference, same math as kernel).
    loss_bf16_ref = jax.block_until_ready(
        ensemble_forward_ref(x, weights, biases, labels,
                             stream_dtype=jnp.bfloat16))
    # Sanity check against the full-f32 module semantics (bf16 rounding only).
    loss_f32_ref = jax.block_until_ready(
        ensemble_forward_ref(x, weights, biases, labels,
                             stream_dtype=jnp.float32))

    assert jnp.allclose(loss, loss_bf16_ref, rtol=5e-3, atol=5e-3), (
        loss, loss_bf16_ref)
    assert jnp.allclose(loss, loss_f32_ref, rtol=5e-2, atol=5e-2), (
        loss, loss_f32_ref)

    # Second case: N=5 with a deliberately tiny chunk budget to exercise the
    # multi-chunk grid and the zero-member padding / in-kernel validity mask.
    N2 = 5
    weights2 = 0.02 * jax.random.normal(kw2, (N2, D, NUM_CLASSES),
                                        dtype=jnp.float32)
    biases2 = 0.01 * jax.random.normal(kb2, (N2, NUM_CLASSES),
                                       dtype=jnp.float32)
    loss2 = jax.block_until_ready(
        ensemble_forward(x, weights2, biases2, labels,
                         chunk_budget_bytes=2 * NUM_CLASSES * D * 2))
    loss2_bf16_ref = jax.block_until_ready(
        ensemble_forward_ref(x, weights2, biases2, labels,
                             stream_dtype=jnp.bfloat16))
    assert jnp.allclose(loss2, loss2_bf16_ref, rtol=5e-3, atol=5e-3), (
        loss2, loss2_bf16_ref)

    print("KERNEL_OK")
</pallas_src>

<mosaic_0001>
module attributes {stable_mosaic.version = 11 : i64} {
  func.func @ensemble_chunk_kernel(%arg0: i32, %arg1: memref<2x1024xbf16, #tpu.memory_space<vmem>>, %arg2: memref<1x48x1024xbf16, #tpu.memory_space<vmem>>, %arg3: memref<1x1x48xf32, #tpu.memory_space<vmem>>, %arg4: memref<48x3xf32, #tpu.memory_space<vmem>>, %arg5: memref<1x48xi32, #tpu.memory_space<vmem>>, %arg6: memref<2x1xi32, #tpu.memory_space<vmem>>, %arg7: memref<1x1x3xf32, #tpu.memory_space<vmem>>, %arg8: memref<1x8x128xf32, #tpu.memory_space<vmem>>) attributes {dimension_semantics = [#tpu.dimension_semantics<parallel>], iteration_bounds = array<i64: 1>, scalar_prefetch = 0 : i64, scratch_operands = 0 : i64, tpu.core_type = #tpu.core_type<tc>, window_params = [{pipeline_mode = #tpu.pipeline_mode<synchronous>, transform_indices = @transform_0, window_bounds = array<i64: 2, 1024>}, {transform_indices = @transform_1, window_bounds = array<i64: 1, 48, 1024>}, {transform_indices = @transform_2, window_bounds = array<i64: 1, 1, 48>}, {pipeline_mode = #tpu.pipeline_mode<synchronous>, transform_indices = @transform_3, window_bounds = array<i64: 48, 3>}, {pipeline_mode = #tpu.pipeline_mode<synchronous>, transform_indices = @transform_4, window_bounds = array<i64: 1, 48>}, {pipeline_mode = #tpu.pipeline_mode<synchronous>, transform_indices = @transform_5, window_bounds = array<i64: 2, 1>}, {transform_indices = @transform_6, window_bounds = array<i64: 1, 1, 3>}, {transform_indices = @transform_7, window_bounds = array<i64: 1, 8, 128>}]} {
    %c0 = arith.constant 0 : index
    %c0_0 = arith.constant 0 : index
    %0 = vector.load %arg1[%c0, %c0_0] : memref<2x1024xbf16, #tpu.memory_space<vmem>>, vector<2x1024xbf16>
    %c0_1 = arith.constant 0 : index
    %c0_2 = arith.constant 0 : index
    %c0_3 = arith.constant 0 : index
    %1 = vector.load %arg2[%c0_1, %c0_2, %c0_3] : memref<1x48x1024xbf16, #tpu.memory_space<vmem>>, vector<1x48x1024xbf16>
    %2 = vector.shape_cast %1 : vector<1x48x1024xbf16> to vector<48x1024xbf16>
    %cst = arith.constant dense<0.000000e+00> : vector<2x48xf32>
    %3 = tpu.matmul %0, %2, %cst {dimension_numbers = #tpu.dot_dimension_numbers<[1], [1], [0], [0], [0, 0, 1, 0], [], []>} : vector<2x1024xbf16>, vector<48x1024xbf16>, vector<2x48xf32> -> vector<2x48xf32>
    %c0_4 = arith.constant 0 : index
    %c0_5 = arith.constant 0 : index
    %c0_6 = arith.constant 0 : index
    %4 = vector.load %arg3[%c0_4, %c0_5, %c0_6] : memref<1x1x48xf32, #tpu.memory_space<vmem>>, vector<1x1x48xf32>
    %5 = vector.shape_cast %4 : vector<1x1x48xf32> to vector<1x48xf32>
    %6 = vector.broadcast %5 : vector<1x48xf32> to vector<2x48xf32>
    %7 = arith.addf %3, %6 : vector<2x48xf32>
    %cst_7 = arith.constant dense<0xFF800000> : vector<2xf32>
    %8 = vector.multi_reduction <maximumf>, %7, %cst_7 [1] : vector<2x48xf32> to vector<2xf32>
    %9 = vector.shape_cast %8 : vector<2xf32> to vector<2x1xf32>
    %10 = vector.broadcast %9 : vector<2x1xf32> to vector<2x48xf32>
    %11 = arith.subf %7, %10 : vector<2x48xf32>
    %12 = math.exp %11 : vector<2x48xf32>
    %c0_8 = arith.constant 0 : index
    %c0_9 = arith.constant 0 : index
    %13 = vector.load %arg4[%c0_8, %c0_9] : memref<48x3xf32, #tpu.memory_space<vmem>>, vector<48x3xf32>
    %cst_10 = arith.constant dense<0.000000e+00> : vector<2x3xf32>
    %14 = tpu.matmul %12, %13, %cst_10 {dimension_numbers = #tpu.dot_dimension_numbers<[1], [0], [0], [1], [0, 0, 1, 1], [], []>} : vector<2x48xf32>, vector<48x3xf32>, vector<2x3xf32> -> vector<2x3xf32>
    %15 = math.log %14 : vector<2x3xf32>
    %16 = vector.broadcast %9 : vector<2x1xf32> to vector<2x3xf32>
    %17 = arith.addf %16, %15 : vector<2x3xf32>
    %c0_11 = arith.constant 0 : index
    %c0_12 = arith.constant 0 : index
    %c0_13 = arith.constant 0 : index
    %18 = vector.load %arg7[%c0_11, %c0_12, %c0_13] : memref<1x1x3xf32, #tpu.memory_space<vmem>>, vector<1x1x3xf32>
    %19 = vector.shape_cast %18 : vector<1x1x3xf32> to vector<1x3xf32>
    %cst_14 = arith.constant 5.000000e-01 : f32
    %20 = vector.broadcast %cst_14 : f32 to vector<1x3xf32>
    %21 = arith.cmpf ogt, %19, %20 : vector<1x3xf32>
    %cst_15 = arith.constant 0.000000e+00 : f32
    %22 = vector.shape_cast %21 : vector<1x3xi1> to vector<1x3xi1>
    %23 = vector.broadcast %22 : vector<1x3xi1> to vector<2x3xi1>
    %24 = vector.broadcast %cst_15 : f32 to vector<2x3xf32>
    %25 = arith.select %23, %17, %24 : vector<2x3xi1>, vector<2x3xf32>
    %c0_16 = arith.constant 0 : index
    %c0_17 = arith.constant 0 : index
    %26 = vector.load %arg5[%c0_16, %c0_17] : memref<1x48xi32, #tpu.memory_space<vmem>>, vector<1x48xi32>
    %27 = vector.shape_cast %26 : vector<1x48xi32> to vector<1x48xi32>
    %28 = vector.broadcast %27 : vector<1x48xi32> to vector<2x48xi32>
    %c0_18 = arith.constant 0 : index
    %c0_19 = arith.constant 0 : index
    %29 = vector.load %arg6[%c0_18, %c0_19] : memref<2x1xi32, #tpu.memory_space<vmem>>, vector<2x1xi32>
    %30 = vector.shape_cast %29 : vector<2x1xi32> to vector<2x1xi32>
    %31 = vector.broadcast %30 : vector<2x1xi32> to vector<2x48xi32>
    %32 = arith.cmpi eq, %28, %31 : vector<2x48xi32>
    %cst_20 = arith.constant 0.000000e+00 : f32
    %33 = vector.broadcast %cst_20 : f32 to vector<2x48xf32>
    %34 = arith.select %32, %7, %33 : vector<2x48xi1>, vector<2x48xf32>
    %cst_21 = arith.constant dense<0.000000e+00> : vector<2xf32>
    %35 = vector.multi_reduction <add>, %34, %cst_21 [1] : vector<2x48xf32> to vector<2xf32>
    %36 = vector.shape_cast %35 : vector<2xf32> to vector<2x1xf32>
    %cst_22 = arith.constant dense<0.000000e+00> : vector<2xf32>
    %37 = vector.multi_reduction <add>, %25, %cst_22 [1] : vector<2x3xf32> to vector<2xf32>
    %38 = vector.shape_cast %37 : vector<2xf32> to vector<2x1xf32>
    %39 = arith.subf %38, %36 : vector<2x1xf32>
    %40 = vector.shape_cast %39 : vector<2x1xf32> to vector<1x2x1xf32>
    %cst_23 = arith.constant dense<0.000000e+00> : vector<1xf32>
    %41 = vector.multi_reduction <add>, %40, %cst_23 [1, 2] : vector<1x2x1xf32> to vector<1xf32>
    %42 = vector.shape_cast %41 : vector<1xf32> to vector<1x1x1xf32>
    %43 = vector.extract %42[0, 0, 0] : f32 from vector<1x1x1xf32>
    %cst_24 = arith.constant 2.000000e+00 : f32
    %44 = arith.divf %43, %cst_24 : f32
    %45 = vector.broadcast %44 : f32 to vector<1x8x128xf32>
    %c0_25 = arith.constant 0 : index
    %c0_26 = arith.constant 0 : index
    %c0_27 = arith.constant 0 : index
    %46 = vector.load %arg8[%c0_25, %c0_26, %c0_27] : memref<1x8x128xf32, #tpu.memory_space<vmem>>, vector<1x8x128xf32>
    tpu.vector_store %arg8[%c0_25, %c0_26, %c0_27], %45 {strides = array<i32>} : memref<1x8x128xf32, #tpu.memory_space<vmem>>, vector<1x8x128xf32>,
    return
  }
  func.func @transform_0(%arg0: i32) -> (i32, i32) {
    %c0_i32 = arith.constant 0 : i32
    %c0_i32_0 = arith.constant 0 : i32
    %c0_i32_1 = arith.constant 0 : i32
    return %c0_i32, %c0_i32_0 : i32, i32
  }
  func.func @transform_1(%arg0: i32) -> (i32, i32, i32) {
    %c0_i32 = arith.constant 0 : i32
    %c0_i32_0 = arith.constant 0 : i32
    %c0_i32_1 = arith.constant 0 : i32
    return %arg0, %c0_i32, %c0_i32_0 : i32, i32, i32
  }
  func.func @transform_2(%arg0: i32) -> (i32, i32, i32) {
    %c0_i32 = arith.constant 0 : i32
    %c0_i32_0 = arith.constant 0 : i32
    %c0_i32_1 = arith.constant 0 : i32
    return %arg0, %c0_i32, %c0_i32_0 : i32, i32, i32
  }
  func.func @transform_3(%arg0: i32) -> (i32, i32) {
    %c0_i32 = arith.constant 0 : i32
    %c0_i32_0 = arith.constant 0 : i32
    %c0_i32_1 = arith.constant 0 : i32
    return %c0_i32, %c0_i32_0 : i32, i32
  }
  func.func @transform_4(%arg0: i32) -> (i32, i32) {
    %c0_i32 = arith.constant 0 : i32
    %c0_i32_0 = arith.constant 0 : i32
    %c0_i32_1 = arith.constant 0 : i32
    return %c0_i32, %c0_i32_0 : i32, i32
  }
  func.func @transform_5(%arg0: i32) -> (i32, i32) {
    %c0_i32 = arith.constant 0 : i32
    %c0_i32_0 = arith.constant 0 : i32
    %c0_i32_1 = arith.constant 0 : i32
    return %c0_i32, %c0_i32_0 : i32, i32
  }
  func.func @transform_6(%arg0: i32) -> (i32, i32, i32) {
    %c0_i32 = arith.constant 0 : i32
    %c0_i32_0 = arith.constant 0 : i32
    %c0_i32_1 = arith.constant 0 : i32
    return %arg0, %c0_i32, %c0_i32_0 : i32, i32, i32
  }
  func.func @transform_7(%arg0: i32) -> (i32, i32, i32) {
    %c0_i32 = arith.constant 0 : i32
    %c0_i32_0 = arith.constant 0 : i32
    %c0_i32_1 = arith.constant 0 : i32
    return %arg0, %c0_i32, %c0_i32_0 : i32, i32, i32
  }
}

</mosaic_0001>

<bundles_post_ra>
// kernel: tpu_custom_call.1
= control target key start
LH: loop header
LB: loop body
LE: loop exit
PB: predicated region body
PF: predicated region fallthrough
CT: control target
= control target key end

     0   :  { %12 = vsyncpa [#allocation3], 0  ;;  %s695_s0 = inlined_call_operand.vmem [shape: bf16[2,1024], index: 0, kind: input, shape index: {}]   ;;  %s696_s1 = inlined_call_operand.hbm [shape: bf16[1,48,1024], index: 1, kind: input, shape index: {}]   ;;  %s697_s2 = inlined_call_operand.vmem [shape: f32[1,1,48], index: 2, kind: input, shape index: {}]   ;;  %s698_s3 = inlined_call_operand.vmem [shape: f32[48,3], index: 3, kind: input, shape index: {}]   ;;  %s699_s4 = inlined_call_operand.vmem [shape: s32[1,48], index: 4, kind: input, shape index: {}]   ;;  %s700_s5 = inlined_call_operand.vmem [shape: s32[2,1], index: 5, kind: input, shape index: {}]   ;;  %s701_s6 = inlined_call_operand.vmem [shape: f32[1,1,3], index: 6, kind: input, shape index: {}]   ;;  %s702_s7 = inlined_call_operand.hbm [shape: f32[1,8,128], index: 7, kind: output, shape index: {}]  }
   0x1   :  { %13 = vsyncpa [#allocation4], 0  ;;  %s20_s26 = sshll.u32 %s696_s1, 4  ;;  %s608_s27 = smov [#allocation2]   ;;  %s21_s26 = int_to_ptr.hbm [resolvable:$true] %s20_s26 }
   0x2   :  { %s22_s28 = sshll.u32 %s608_s27, 4  ;;  %s609_s29 = smov 512   ;;  %s23_s28 = int_to_ptr.vmem [resolvable:$true] %s22_s28 }
   0x3   :  { %s610_s30 = smov 32  }
   0x4   :  { %28 = dma.hbm_to_vmem [thread:$0]  %s21_s26, 3072, %s23_s28, [#allocation3], %s609_s29, %s609_s29, %s610_s30  }
   0x5   :  { %604 = dma.done.wait [#allocation3], 3072  }
   0x6   :  { %605 = vsyncadd [#allocation3], 4294964224  ;;  %v482_v0 = vld [vmem:[#allocation2 + $0x80] sm:$0xf]  ;;  %v529_v2 = vld [vmem:[#allocation2 + $0x84] sm:$0xf] }
   0x7   :  { %v533_v1 = vld [vmem:[#allocation2 + $0x9c] sm:$0xf0]  ;;  %v484_v4 = vld [vmem:[#allocation2 + $0xa0] sm:$0xf0]  ;;  %v490_v5 = vld [vmem:[#allocation2 + $0x88] sm:$0xf] }
   0x8   :  { %v483_v3 = vor.u32 %v533_v1, %v482_v0  ;;  %v534_v6 = vld [vmem:[#allocation2 + $0xa4] sm:$0xf0]  ;;  %v487_v7 = vor.u32 %v529_v2, %v484_v4  ;;  %v530_v9 = vld [vmem:[#allocation2 + $0x8c] sm:$0xf]  ;;  %v450_v12 = vld [vmem:[#allocation2 + $0x40] sm:$0xf] }
   0x9   :  { %v491_v8 = vor.u32 %v534_v6, %v490_v5  ;;  %v492_v10 = vld [vmem:[#allocation2 + $0xa8] sm:$0xf0]  ;;  %v525_v13 = vld [vmem:[#allocation2 + $0x5c] sm:$0xf0]  ;;  %v521_v14 = vld [vmem:[#allocation2 + $0x44] sm:$0xf] }
   0xa   :  { %216 = vmatpush.bf16.xpose.msra.mxu0 %v483_v3  ;;  %v495_v11 = vor.u32 %v530_v9, %v492_v10  ;;  %229 = vmatpush.bf16.xpose.msra.mxu1 %v487_v7  ;;  %v452_v15 = vld [vmem:[#allocation2 + $0x60] sm:$0xf0]  ;;  %v458_v16 = vld [vmem:[#allocation2 + $0x48] sm:$0xf]  ;;  %v522_v18 = vld [vmem:[#allocation2 + $0x4c] sm:$0xf]  ;;  %v451_v20 = vor.u32 %v525_v13, %v450_v12 }
   0xb   :  { %242 = vmatpush.bf16.xpose.msra.mxu2 %v491_v8  ;;  %v526_v17 = vld [vmem:[#allocation2 + $0x64] sm:$0xf0]  ;;  %v460_v19 = vld [vmem:[#allocation2 + $0x68] sm:$0xf0]  ;;  %v455_v21 = vor.u32 %v521_v14, %v452_v15  ;;  %v44_v24 = vld [vmem:[%s695_s0] sm:$0xff]  ;;  %vm315_vm0 = vcmask 386048  }
   0xc   :  { %255 = vmatpush.bf16.xpose.msra.mxu3 %v495_v11  ;;  %v459_v22 = vor.u32 %v526_v17, %v458_v16  ;;  %v463_v23 = vor.u32 %v522_v18, %v460_v19  ;;  %v418_v25 = vld [vmem:[#allocation2] sm:$0xf]  ;;  %74 = vst [vmem:[#allocation1] ss:$9 sm:$0xff] %v44_v24  ;;  %v513_v27 = vld [vmem:[#allocation2 + $0x4] sm:$0xf] }
   0xd   :  { %v517_v26 = vld [vmem:[#allocation2 + $0x1c] sm:$0xf0]  ;;  %v420_v28 = vld [vmem:[#allocation2 + $0x20] sm:$0xf0]  ;;  %v426_v29 = vld [vmem:[#allocation2 + $0x8] sm:$0xf] }
   0xe   :  { %v518_v30 = vld [vmem:[#allocation2 + $0x24] sm:$0xf0]  ;;  %v514_v31 = vld [vmem:[#allocation2 + $0xc] sm:$0xf]  ;;  %v498_v33 = vld [vmem:[#allocation2 + $0x90] sm:$0xf]  ;;  %v419_v36 = vor.u32 %v517_v26, %v418_v25  ;;  %v423_v40 = vor.u32 %v513_v27, %v420_v28 }
   0xf   :  { %v428_v32 = vld [vmem:[#allocation2 + $0x28] sm:$0xf0]  ;;  %v535_v34 = vld [vmem:[#allocation2 + $0xac] sm:$0xf0]  ;;  %v531_v35 = vld [vmem:[#allocation2 + $0x94] sm:$0xf]  ;;  %v427_v41 = vor.u32 %v518_v30, %v426_v29 }
  0x10   :  { %v500_v37 = vld [vmem:[#allocation2 + $0xb0] sm:$0xf0]  ;;  %v506_v38 = vld [vmem:[#allocation2 + $0x98] sm:$0xf]  ;;  %v532_v42 = vld [vmem:[#allocation2 + $0x9c] sm:$0xf]  ;;  %v431_v44 = vor.u32 %v514_v31, %v428_v32  ;;  %v499_v45 = vor.u32 %v535_v34, %v498_v33 }
  0x11   :  { %v536_v39 = vld [vmem:[#allocation2 + $0xb4] sm:$0xf0]  ;;  %v508_v43 = vld [vmem:[#allocation2 + $0xb8] sm:$0xf0]  ;;  %v503_v46 = vor.u32 %v531_v35, %v500_v37  ;;  %v466_v49 = vld [vmem:[#allocation2 + $0x50] sm:$0xf] }
  0x12   :  { %217 = vmatpush.bf16.xpose.msra.mxu0 %v451_v20  ;;  %230 = vmatpush.bf16.xpose.msra.mxu1 %v455_v21  ;;  %v507_v47 = vor.u32 %v536_v39, %v506_v38  ;;  %v511_v48 = vor.u32 %v532_v42, %v508_v43  ;;  %v527_v50 = vld [vmem:[#allocation2 + $0x6c] sm:$0xf0]  ;;  %v523_v51 = vld [vmem:[#allocation2 + $0x54] sm:$0xf]  ;;  %v474_v53 = vld [vmem:[#allocation2 + $0x58] sm:$0xf] }
  0x13   :  { %243 = vmatpush.bf16.xpose.msra.mxu2 %v459_v22  ;;  %v468_v52 = vld [vmem:[#allocation2 + $0x70] sm:$0xf0]  ;;  %v75_v54 = vld [vmem:[#allocation1] sm:$0xff]  ;;  %v76_v57 = vld [vmem:[#allocation1 + $0x9] sm:$0xff]  ;;  %v467_v61 = vor.u32 %v527_v50, %v466_v49  ;;  %v611_v20 = vmov 0   ;;  %vm328_vm1 = vcmask 392192  }
  0x14   :  { %256 = vmatpush.bf16.xpose.msra.mxu3 %v463_v23  ;;  %v528_v55 = vld [vmem:[#allocation2 + $0x74] sm:$0xf0]  ;;  %v524_v56 = vld [vmem:[#allocation2 + $0x5c] sm:$0xf]  ;;  %v77_v58 = vld [vmem:[#allocation1 + $0x12] sm:$0xff]  ;;  %v471_v62 = vor.u32 %v523_v51, %v468_v52  ;;  %547 = vset.pattern.permute.xlu0 %v611_v20  ;;  %vm372_vm5 = vcmask 17408  }
  0x15   :  { %v476_v59 = vld [vmem:[#allocation2 + $0x78] sm:$0xf0]  ;;  %v78_v60 = vld [vmem:[#allocation1 + $0x1b] sm:$0xff]  ;;  %v475_v63 = vor.u32 %v528_v55, %v474_v53  ;;  %v80_v14 = vld [vmem:[#allocation1 + $0x2d] sm:$0xff]  ;;  %vm377_vm6 = vcmask 1024   ;;  %s406_s28 = sshll.u32 %s702_s7, 4  ;;  %s407_s28 = int_to_ptr.hbm [resolvable:$true] %s406_s28 }
  0x16   :  { %v479_v0 = vor.u32 %v524_v56, %v476_v59  ;;  %v434_v1 = vld [vmem:[#allocation2 + $0x10] sm:$0xf]  ;;  %v515_v3 = vld [vmem:[#allocation2 + $0x14] sm:$0xf]  ;;  %v442_v5 = vld [vmem:[#allocation2 + $0x18] sm:$0xf] }
  0x17   :  { %v519_v2 = vld [vmem:[#allocation2 + $0x2c] sm:$0xf0]  ;;  %v436_v4 = vld [vmem:[#allocation2 + $0x30] sm:$0xf0]  ;;  %v520_v6 = vld [vmem:[#allocation2 + $0x34] sm:$0xf0] }
  0x18   :  { %v516_v7 = vld [vmem:[#allocation2 + $0x1c] sm:$0xf]  ;;  %v435_v9 = vor.u32 %v519_v2, %v434_v1  ;;  %v439_v10 = vor.u32 %v515_v3, %v436_v4  ;;  %v443_v11 = vor.u32 %v520_v6, %v442_v5  ;;  %v81_v15 = vld [vmem:[#allocation1 + $0x36] sm:$0xff]  ;;  %v548_v19 = vld [vmem:[%s697_s2] ss:$0 sm:$0xff] }
  0x19   :  { %v444_v8 = vld [vmem:[#allocation2 + $0x38] sm:$0xf0]  ;;  %v327_v33 = vld [vmem:[%s698_s3 + $0x28] sm:$0xff]  ;;  %v549_v55 = vld [vmem:[%s699_s4] ss:$0 sm:$0xff]  ;;  %s613_s4 = smov [#allocation5]  }
  0x1a   :  { %218 = vmatpush.bf16.xpose.msra.mxu0 %v419_v36  ;;  %231 = vmatpush.bf16.xpose.msra.mxu1 %v423_v40  ;;  %v447_v12 = vor.u32 %v516_v7, %v444_v8  ;;  %v79_v13 = vld [vmem:[#allocation1 + $0x24] sm:$0xff]  ;;  %v355_v59 = vld [vmem:[%s701_s6] sm:$0x1]  ;;  %v612_v8 = vmov 2.0   ;;  %s404_s6 = sshll.u32 %s613_s4, 4  ;;  %s405_s6 = int_to_ptr.vmem [resolvable:$true] %s404_s6 }
  0x1b   :  { %244 = vmatpush.bf16.xpose.msra.mxu2 %v427_v41  ;;  %v82_v16 = vld [vmem:[#allocation1 + $0x3f] sm:$0xff]  ;;  %v323_v49 = vld [vmem:[%s698_s3 + $0x8] sm:$0xff]  ;;  %vm356_vm3 = vcmp.gt.f32.partialorder %v355_v59, 0.5 }
  0x1c   :  { %257 = vmatpush.bf16.xpose.msra.mxu3 %v431_v44  ;;  %v326_v34 = vld [vmem:[%s698_s3 + $0x20] sm:$0xff] }
  0x1d   :  { %v322_v50 = vld [vmem:[%s698_s3] sm:$0xff] }
  0x21   :  { %219 = vmatmul.bf16.vlgmr.msra.gmra.mxu0 %v75_v54  ;;  %232 = vmatmul.bf16.vlgmr.msra.gmra.mxu1 %v76_v57 }
  0x22   :  { %268 = vmatpush.bf16.xpose.msrb.mxu0 %v499_v45  ;;  %281 = vmatpush.bf16.xpose.msrb.mxu1 %v503_v46  ;;  %v363_v46 = vld [vmem:[%s700_s5] sm:$0x3] }
  0x23   :  { %294 = vmatpush.bf16.xpose.msrb.mxu2 %v507_v47  ;;  %258 = vmatmul.bf16.vlgmr.msra.gmra.mxu3 %v78_v60  ;;  %v325_v47 = vld [vmem:[%s698_s3 + $0x18] sm:$0xff] }
  0x24   :  { %307 = vmatpush.bf16.xpose.msrb.mxu3 %v511_v48  ;;  %245 = vmatmul.bf16.vlgmr.msra.gmra.mxu2 %v77_v58  ;;  %v324_v48 = vld [vmem:[%s698_s3 + $0x10] sm:$0xff] }
  0x2a   :  { %269 = vmatpush.bf16.xpose.msrb.mxu0 %v467_v61  ;;  %282 = vmatpush.bf16.xpose.msrb.mxu1 %v471_v62  ;;  %v357_v61 = vsel %vm356_vm3, 1, %v611_v20 }
  0x2b   :  { %295 = vmatpush.bf16.xpose.msrb.mxu2 %v475_v63  ;;  %v358_v62 = vperm.slane %v357_v61, 0 }
  0x2c   :  { %308 = vmatpush.bf16.xpose.msrb.mxu3 %v479_v0 }
  0x2d   :  { %vm359_vm4 = vcmp.eq.s32.totalorder %v358_v62, 1 }
  0x32   :  { %270 = vmatpush.bf16.xpose.msrb.mxu0 %v435_v9  ;;  %283 = vmatpush.bf16.xpose.msrb.mxu1 %v439_v10 }
  0x33   :  { %296 = vmatpush.bf16.xpose.msrb.mxu2 %v443_v11 }
  0x34   :  { %309 = vmatpush.bf16.xpose.msrb.mxu3 %v447_v12 }
  0x39   :  { %271 = vmatmul.bf16.vlgmr.msrb.gmra.mxu0 %v79_v13  ;;  %284 = vmatmul.bf16.vlgmr.msrb.gmra.mxu1 %v80_v14 }
  0x3a   :  { %297 = vmatmul.bf16.vlgmr.msrb.gmra.mxu2 %v81_v15  ;;  %342 = vmatpush.msra.mxu0 %v327_v33 }
  0x3b   :  { %310 = vmatmul.bf16.vlgmr.msrb.gmra.mxu3 %v82_v16 }
  0x3c   :  { %343 = vmatpush.msra.mxu0 %v326_v34 }
  0x3e   :  { %344 = vmatpush.msra.mxu0 %v325_v47 }
  0x40   :  { %345 = vmatpush.msra.mxu0 %v324_v48 }
  0x42   :  { %346 = vmatpush.msra.mxu0 %v323_v49 }
  0x44   :  { %347 = vmatpush.msra.mxu0 %v322_v50 }
  0x9e   :  { %v220_v17 = vpop.f32.mrf.mxu0  ;;  %v233_v18 = vpop.f32.mrf.mxu1 }
  0x9f   :  { %v221_v21 = vadd.f32 %v548_v19, %v220_v17 }
  0xa1   :  { %v234_v26 = vadd.f32 %v233_v18, %v221_v21 }
  0xa6   :  { %v259_v23 = vpop.f32.mrf.mxu3  ;;  %v222_v24 = vpop.f32.mrf.mxu0 }
  0xa7   :  { %v246_v22 = vpop.f32.mrf.mxu2  ;;  %v235_v25 = vpop.f32.mrf.mxu1 }
  0xa8   :  { %v247_v27 = vadd.f32 %v246_v22, %v234_v26 }
  0xaa   :  { %v260_v30 = vadd.f32 %v259_v23, %v247_v27 }
  0xae   :  { %v261_v29 = vpop.f32.mrf.mxu3 }
  0xaf   :  { %v248_v28 = vpop.f32.mrf.mxu2 }
  0xb6   :  { %v272_v31 = vpop.f32.mrf.mxu0  ;;  %v285_v32 = vpop.f32.mrf.mxu1 }
  0xb7   :  { %v273_v35 = vadd.f32 %v272_v31, %v260_v30 }
  0xb9   :  { %v286_v36 = vadd.f32 %v285_v32, %v273_v35 }
  0xbd   :  { %v298_v37 = vpop.f32.mrf.mxu2 }
  0xbe   :  { %v299_v38 = vadd.f32 %v298_v37, %v286_v36  ;;  %v311_v39 = vpop.f32.mrf.mxu3  ;;  %v274_v40 = vpop.f32.mrf.mxu0 }
  0xbf   :  { %v287_v41 = vpop.f32.mrf.mxu1 }
  0xc0   :  { %v312_v42 = vadd.f32 %v311_v39, %v299_v38 }
  0xc2   :  { %v316_v43 = vsel %vm315_vm0, %v312_v42, -inf }
  0xc3   :  { %317 = vmax.xlane.f32.xlu0 %v316_v43 }
  0xc5   :  { %v300_v44 = vpop.f32.mrf.mxu2 }
  0xc6   :  { %v313_v45 = vpop.f32.mrf.mxu3 }
  0xd7   :  { %365 = vperm.xlu0 %547, %v363_v46  }
 0x136   :  { %v318_v51 = vpop.xlane.xlu0 %317 }
 0x137   :  { %v319_v52 = vsub.f32 %v312_v42, %v318_v51 }
 0x139   :  { %v320_v53 = vmul.f32 1.442695, %v319_v52 }
 0x13b   :  { %550 = vpow2.f32 %v320_v53 }
 0x141   :  { %v551_v54 = vpop.eup %550 }
 0x142   :  { %512 = vmatmul.msk.f32.vlgmr.msra.gmra.mxu0 %vm328_vm1, %v551_v54 }
 0x149   :  { %v366_v56 = vpop.permute.xlu0 %365 }
 0x14a   :  { %vm367_vm2 = vcmp.eq.s32.totalorder %v549_v55, %v366_v56 }
 0x14b   :  { %v368_v57 = vsel %vm367_vm2, %v312_v42, 0.0 }
 0x14c   :  { %v369_v58 = vsel %vm315_vm0, %v368_v57, 0.0 }
 0x14d   :  { %370 = vadd.xlane.f32.xlu1 %v369_v58 }
 0x1bf   :  { %v349_v60 = vpop.f32.mrf.mxu0 }
 0x1c0   :  { %552 = vlog2.f32 %v349_v60  ;;  %v371_v4 = vpop.xlane.xlu1 %370 }
 0x1c1   :  { %554 = vrcp.f32 %v612_v8 }
 0x1c6   :  { %v553_v63 = vpop.eup %552 }
 0x1c7   :  { %v353_v0 = vmul.f32 0.6931472, %v553_v63  ;;  %v555_v9 = vpop.eup %554 }
 0x1c8   :  { %v389_v10 = vmul.f32 2.0, %v555_v9  ;;  %vm393_vm7 = vweird.f32 %v555_v9 }
 0x1c9   :  { %v354_v1 = vadd.f32 %v353_v0, %v318_v51 }
 0x1ca   :  { %v390_v11 = vsub.f32 1.0, %v389_v10 }
 0x1cb   :  { %v360_v2 = vsel %vm359_vm4, %v354_v1, 0.0 }
 0x1cc   :  { %v373_v3 = vsel %vm372_vm5, %v360_v2, 0.0  ;;  %v391_v15 = vmul.f32 %v555_v9, %v390_v11 }
 0x1cd   :  { %374 = vadd.xlane.f32.xlu1 %v373_v3 }
 0x1ce   :  { %v392_v18 = vadd.f32 %v555_v9, %v391_v15 }
 0x1d0   :  { %v394_v21 = vsel %vm393_vm7, %v555_v9, %v392_v18 }
 0x240   :  { %v375_v5 = vpop.xlane.xlu1 %374 }
 0x241   :  { %v376_v6 = vsub.f32 %v375_v5, %v371_v4 }
 0x243   :  { %v378_v7 = vsel %vm377_vm6, %v376_v6, 0.0 }
 0x244   :  { %379 = vadd.xlane.f32.xlu2 %v378_v7 }
 0x2b7   :  { %v380_v12 = vpop.xlane.xlu2 %379 }
 0x2b8   :  { %v381_v13 = vrot.slane %v380_v12, 4 }
 0x2ba   :  { %v382_v14 = vadd.f32 %v381_v13, %v380_v12 }
 0x2bc   :  { %v383_v16 = vrot.slane %v382_v14, 2 }
 0x2be   :  { %v384_v17 = vadd.f32 %v383_v16, %v382_v14 }
 0x2c0   :  { %v385_v19 = vrot.slane %v384_v17, 1 }
 0x2c2   :  { %v386_v20 = vadd.f32 %v385_v19, %v384_v17 }
 0x2c4   :  { %537 = vpush %v386_v20 }
 0x2c5   :  { %539 = vpush %v394_v21 }
 0x2f5   :  { %s538_s25 = spop %537 }
 0x2f6   :  { %s540_s29 = spop %539 }
 0x2f7   :  { %s396_s30 = smul.f32 %s540_s29, %s538_s25 }
 0x2f9   :  { %v397_v22 = vstv %s396_s30 }
 0x2fa   :  { %398 = vst [vmem:[#allocation5] sm:$0xff] %v397_v22 }
 0x2fb   :  { %409 = dma.vmem_to_hbm [thread:$0]  %s405_s6, 128, %s407_s28, [#allocation4]  }
 0x2fc   :  { %606 = dma.done.wait [#allocation4], 128  }
 0x2fd   :  { %607 = vsyncadd [#allocation4], 4294967168 }
 0x2fe   :  { %414 = vsyncpa [#allocation3], 1 }
 0x2ff   :  { %415 = vsyncpa [#allocation4], 1 }

</bundles_post_ra>
